<compile_context>
chip_gen: v7x
topology: tpu7x:2x2x1
jax: 0.10.0
libtpu: 0.0.40
codegen_flags: <defaults>
</compile_context>

<pallas_src>
import functools

import jax
import jax.numpy as jnp
from jax import lax
from jax.experimental import pallas as pl
from jax.experimental.pallas import tpu as pltpu

_MIB = 1024 * 1024


# ----------------------------------------------------------------------------
# Per-generation tuning knobs.
# ----------------------------------------------------------------------------
def _tpu_tuning():
    kind = ""
    try:
        devs = jax.devices()
        if devs and devs[0].platform == "tpu":
            kind = devs[0].device_kind.lower()
    except Exception:
        pass
    is_v7 = ("v7" in kind) or ("tpu7" in kind)
    # v5e / v6e have 128 MiB physical VMEM; v7x only 64 MiB per TensorCore.
    if is_v7 or not kind:
        vmem_limit = 48 * _MIB
    else:
        vmem_limit = 100 * _MIB
    # bf16 VPU/EUP only on v6e / v7x; keep softmax path f32 elsewhere.
    softmax_dtype = jnp.bfloat16 if ("v6" in kind or is_v7) else jnp.float32
    big_tiles = not is_v7
    return vmem_limit, softmax_dtype, big_tiles


def _round_up(n, m):
    return ((n + m - 1) // m) * m


def _pick_tiles(n_pad, big_tiles):
    """Row tile (prefer >=2 grid steps for megacore) and key/column tile."""
    q_cands = (512, 256, 128) if big_tiles else (256, 128)
    tq = 128
    for t in q_cands:
        if n_pad % t == 0 and n_pad // t >= 2:
            tq = t
            break
    tk = 128
    for t in (512, 256, 128):
        if n_pad % t == 0:
            tk = t
            break
    return tq, tk


# ----------------------------------------------------------------------------
# Kernel A: fused per-head projections.
#   wh   = h @ W_all                        (TQ, nheads*fout)  bf16
#   sc1  = wh @ A1_blockdiag                (TQ, nheads)       f32
#   sc2t = A2_blockdiag^T contracted w/ wh  (nheads, TQ)       f32 (transposed)
# ----------------------------------------------------------------------------
def _proj_kernel(h_ref, w_ref, a1_ref, a2_ref, wh_ref, sc1_ref, sc2t_ref):
    wh = jnp.dot(h_ref[...], w_ref[...], preferred_element_type=jnp.float32)
    whb = wh.astype(jnp.bfloat16)
    wh_ref[...] = whb
    sc1_ref[...] = jnp.dot(whb, a1_ref[...], preferred_element_type=jnp.float32)
    sc2t_ref[...] = lax.dot_general(
        a2_ref[...], whb, (((0,), (1,)), ((), ())),
        preferred_element_type=jnp.float32)


# ----------------------------------------------------------------------------
# Kernel B: masked attention + aggregation, online softmax over key tiles.
# ----------------------------------------------------------------------------
def _attn_kernel(adj_ref, sc1_ref, sc2t_ref, wh_ref, out_ref,
                 m_sc, l_sc, acc_sc,
                 *, nheads, fout, alpha, apply_elu, softmax_dtype):
    k = pl.program_id(1)

    @pl.when(k == 0)
    def _():
        m_sc[...] = jnp.full_like(m_sc, -jnp.inf)
        l_sc[...] = jnp.zeros_like(l_sc)
        acc_sc[...] = jnp.zeros_like(acc_sc)

    # Additive mask bias computed once per tile, shared by all heads.
    neg_big = jnp.float32(-2.0 ** 31)
    bias = jnp.where(adj_ref[...] > 0, jnp.float32(0.0), neg_big)   # (TQ, TK)
    sc1 = sc1_ref[...]              # (TQ, nheads) f32 (resident over k)
    sc2t = sc2t_ref[...]            # (nheads, TK) f32
    whb = wh_ref[...]               # (TK, nheads*fout) bf16
    alpha_f = jnp.float32(alpha)

    for hd in range(nheads):        # static unroll; nheads is small
        e = sc1[:, hd:hd + 1] + sc2t[hd:hd + 1, :]            # (TQ, TK)
        e = jnp.maximum(e, alpha_f * e)                       # LeakyReLU
        logits = e + bias
        m_prev = m_sc[:, hd:hd + 1]                           # (TQ, 1)
        m_new = jnp.maximum(m_prev, jnp.max(logits, axis=1, keepdims=True))
        scale = jnp.exp(m_prev - m_new)                       # (TQ, 1) f32
        p = jnp.exp((logits - m_new).astype(softmax_dtype))   # bf16 on v6e/v7x
        l_sc[:, hd:hd + 1] = (
            scale * l_sc[:, hd:hd + 1]
            + jnp.sum(p.astype(jnp.float32), axis=1, keepdims=True))
        contrib = jnp.dot(p.astype(jnp.bfloat16),
                          whb[:, hd * fout:(hd + 1) * fout],
                          preferred_element_type=jnp.float32)  # (TQ, fout)
        acc_sc[:, hd * fout:(hd + 1) * fout] = (
            scale * acc_sc[:, hd * fout:(hd + 1) * fout] + contrib)
        m_sc[:, hd:hd + 1] = m_new

    @pl.when(k == pl.num_programs(1) - 1)
    def _():
        # Normalize AFTER aggregation (EUP reciprocal); per-head direct store.
        for hd in range(nheads):
            inv_l = pl.reciprocal(l_sc[:, hd:hd + 1], approx=True)
            hp = acc_sc[:, hd * fout:(hd + 1) * fout] * inv_l
            if apply_elu:
                hp = jnp.where(hp > 0, hp, jnp.exp(hp) - 1.0)
            out_ref[:, hd * fout:(hd + 1) * fout] = hp.astype(out_ref.dtype)


# ----------------------------------------------------------------------------
# One fused GraphAttentionLayer (all heads) through the two kernels.
# ----------------------------------------------------------------------------
def gat_layer_fused(h, w_all, a1, a2, adj_i8, *, nheads, fout, alpha,
                    apply_elu, out_dtype, vmem_limit, softmax_dtype, big_tiles):
    n, fin = h.shape
    h_all = nheads * fout
    assert n % 128 == 0, "caller must pad the node count to a multiple of 128"
    assert w_all.shape == (fin, h_all) and adj_i8.shape == (n, n)
    tq, tk = _pick_tiles(n, big_tiles)

    hb = h.astype(jnp.bfloat16)
    wb = w_all.astype(jnp.bfloat16)
    a1b = a1.astype(jnp.bfloat16)
    a2b = a2.astype(jnp.bfloat16)

    wh, sc1, sc2t = pl.pallas_call(
        _proj_kernel,
        out_shape=(jax.ShapeDtypeStruct((n, h_all), jnp.bfloat16),
                   jax.ShapeDtypeStruct((n, nheads), jnp.float32),
                   jax.ShapeDtypeStruct((nheads, n), jnp.float32)),
        grid=(n // tq,),
        in_specs=[
            pl.BlockSpec((tq, fin), lambda i: (i, 0)),        # h row tile
            pl.BlockSpec((fin, h_all), lambda i: (0, 0)),     # W_all (resident)
            pl.BlockSpec((h_all, nheads), lambda i: (0, 0)),  # A1 (resident)
            pl.BlockSpec((h_all, nheads), lambda i: (0, 0)),  # A2 (resident)
        ],
        out_specs=(
            pl.BlockSpec((tq, h_all), lambda i: (i, 0)),
            pl.BlockSpec((tq, nheads), lambda i: (i, 0)),
            pl.BlockSpec((nheads, tq), lambda i: (0, i)),
        ),
        compiler_params=pltpu.CompilerParams(
            dimension_semantics=("parallel",),
            vmem_limit_bytes=vmem_limit),
    )(hb, wb, a1b, a2b)

    kernel = functools.partial(_attn_kernel, nheads=nheads, fout=fout,
                               alpha=alpha, apply_elu=apply_elu,
                               softmax_dtype=softmax_dtype)
    out = pl.pallas_call(
        kernel,
        out_shape=jax.ShapeDtypeStruct((n, h_all), out_dtype),
        grid=(n // tq, n // tk),
        in_specs=[
            pl.BlockSpec((tq, tk), lambda i, k: (i, k)),       # adj tile (int8)
            pl.BlockSpec((tq, nheads), lambda i, k: (i, 0)),   # query scores
            pl.BlockSpec((nheads, tk), lambda i, k: (0, k)),   # key scores (T)
            pl.BlockSpec((tk, h_all), lambda i, k: (k, 0)),    # Wh column slab
        ],
        out_specs=pl.BlockSpec((tq, h_all), lambda i, k: (i, 0)),
        scratch_shapes=[
            pltpu.VMEM((tq, nheads), jnp.float32),   # running max  m
            pltpu.VMEM((tq, nheads), jnp.float32),   # running sum  l
            pltpu.VMEM((tq, h_all), jnp.float32),    # running numerator acc
        ],
        compiler_params=pltpu.CompilerParams(
            dimension_semantics=("parallel", "arbitrary"),
            vmem_limit_bytes=vmem_limit),
    )(adj_i8, sc1, sc2t, wh)
    return out


# ----------------------------------------------------------------------------
# Parameter init (xavier_uniform with gain=1.414) and per-head packing.
# ----------------------------------------------------------------------------
def xavier_uniform(key, shape, gain=1.414):
    fan_in, fan_out = shape[0], shape[1]
    bound = gain * jnp.sqrt(6.0 / (fan_in + fan_out))
    return jax.random.uniform(key, shape, jnp.float32, -bound, bound)


def init_gat_params(key, nfeat, nhid, nclass, nheads):
    params = {"heads": [], "out": {}}
    keys = jax.random.split(key, 2 * nheads + 2)
    for i in range(nheads):
        params["heads"].append({
            "W": xavier_uniform(keys[2 * i], (nfeat, nhid)),
            "a": xavier_uniform(keys[2 * i + 1], (2 * nhid, 1)),
        })
    params["out"]["W"] = xavier_uniform(keys[-2], (nhid * nheads, nclass))
    params["out"]["a"] = xavier_uniform(keys[-1], (2 * nclass, 1))
    return params


def pack_heads(head_params, fout):
    """Stack per-head W's side by side; block-diagonal a1/a2 matrices."""
    nheads = len(head_params)
    h_all = nheads * fout
    w_all = jnp.concatenate([hp["W"] for hp in head_params], axis=1)
    a1 = jnp.zeros((h_all, nheads), jnp.float32)
    a2 = jnp.zeros((h_all, nheads), jnp.float32)
    for i, hp in enumerate(head_params):
        a1 = a1.at[i * fout:(i + 1) * fout, i].set(hp["a"][:fout, 0])
        a2 = a2.at[i * fout:(i + 1) * fout, i].set(hp["a"][fout:, 0])
    return w_all, a1, a2


# ----------------------------------------------------------------------------
# GAT forward.  Dropout = identity (inference); final F.elu fused in layer 2.
# ----------------------------------------------------------------------------
def gat_forward(params, x, adj, *, alpha):
    nheads = len(params["heads"])
    nhid = params["heads"][0]["W"].shape[1]
    nclass = params["out"]["W"].shape[1]
    vmem_limit, softmax_dtype, big_tiles = _tpu_tuning()

    n = x.shape[0]
    n_pad = _round_up(n, 128)
    adj_i8 = (adj > 0).astype(jnp.int8)            # 0/1 mask, 4x smaller DMA
    if n_pad != n:
        x = jnp.pad(x, ((0, n_pad - n), (0, 0)))
        adj_i8 = jnp.pad(adj_i8, ((0, n_pad - n), (0, n_pad - n)))

    # TODO(synk): training-mode dropout (input / hidden / attention-matrix) is
    # not implemented; this path is inference-only (dropout == identity).
    w_all, a1, a2 = pack_heads(params["heads"], nhid)
    x = gat_layer_fused(x, w_all, a1, a2, adj_i8, nheads=nheads, fout=nhid,
                        alpha=alpha, apply_elu=True, out_dtype=jnp.bfloat16,
                        vmem_limit=vmem_limit, softmax_dtype=softmax_dtype,
                        big_tiles=big_tiles)                    # (Np, nheads*nhid)
    a_out = params["out"]["a"]
    x = gat_layer_fused(x, params["out"]["W"], a_out[:nclass, :],
                        a_out[nclass:, :], adj_i8, nheads=1, fout=nclass,
                        alpha=alpha, apply_elu=True, out_dtype=jnp.float32,
                        vmem_limit=vmem_limit, softmax_dtype=softmax_dtype,
                        big_tiles=big_tiles)                    # outer F.elu fused
    return x[:n]


# ----------------------------------------------------------------------------
# Pure-JAX reference mirroring the kernel's numerics (bf16 MXU operands,
# softmax-path dtype, post-matmul normalization).
# ----------------------------------------------------------------------------
def gat_layer_ref(h, w_all, a1, a2, adj, *, nheads, fout, alpha, apply_elu,
                  softmax_dtype):
    bf = jnp.bfloat16
    wh = jnp.dot(h.astype(bf), w_all.astype(bf),
                 preferred_element_type=jnp.float32)
    whb = wh.astype(bf)
    sc1 = jnp.dot(whb, a1.astype(bf), preferred_element_type=jnp.float32)
    sc2 = jnp.dot(whb, a2.astype(bf), preferred_element_type=jnp.float32)
    outs = []
    for i in range(nheads):
        e = sc1[:, i:i + 1] + sc2[:, i:i + 1].T
        e = jnp.maximum(e, alpha * e)
        logits = jnp.where(adj > 0, e, jnp.float32(-2.0 ** 31))
        m = jnp.max(logits, axis=1, keepdims=True)
        p = jnp.exp((logits - m).astype(softmax_dtype))
        l = jnp.sum(p.astype(jnp.float32), axis=1, keepdims=True)
        hp = jnp.dot(p.astype(bf), whb[:, i * fout:(i + 1) * fout],
                     preferred_element_type=jnp.float32) / l
        if apply_elu:
            hp = jnp.where(hp > 0, hp, jnp.exp(hp) - 1.0)
        outs.append(hp)
    return jnp.concatenate(outs, axis=1) if nheads > 1 else outs[0]


def gat_forward_ref(params, x, adj, *, alpha):
    nheads = len(params["heads"])
    nhid = params["heads"][0]["W"].shape[1]
    nclass = params["out"]["W"].shape[1]
    _, softmax_dtype, _ = _tpu_tuning()
    w_all, a1, a2 = pack_heads(params["heads"], nhid)
    x = gat_layer_ref(x, w_all, a1, a2, adj, nheads=nheads, fout=nhid,
                      alpha=alpha, apply_elu=True, softmax_dtype=softmax_dtype)
    a_out = params["out"]["a"]
    x = gat_layer_ref(x, params["out"]["W"], a_out[:nclass, :],
                      a_out[nclass:, :], adj, nheads=1, fout=nclass,
                      alpha=alpha, apply_elu=True, softmax_dtype=softmax_dtype)
    return x


if __name__ == "__main__":
    # Small GAT config
    N, NFEAT, NHID, NCLASS, NHEADS = 8, 16, 8, 4, 2
    ALPHA = 0.2
    DROPOUT = 0.6  # identity at inference

    key = jax.random.PRNGKey(0)
    kx, kadj, kparams = jax.random.split(key, 3)

    x = jax.random.normal(kx, (N, NFEAT), jnp.float32)
    adj = (jax.random.uniform(kadj, (N, N)) > 0.5).astype(jnp.float32)
    adj = jnp.maximum(adj, jnp.eye(N, dtype=jnp.float32))  # self-loops

    params = init_gat_params(kparams, NFEAT, NHID, NCLASS, NHEADS)

    out = gat_forward(params, x, adj, alpha=ALPHA)
    out = jax.block_until_ready(out)

    ref = gat_forward_ref(params, x, adj, alpha=ALPHA)
    assert out.shape == (N, NCLASS)
    max_err = float(jnp.max(jnp.abs(out - ref)))
    assert jnp.allclose(out, ref, atol=3e-2, rtol=3e-2), max_err

    print("KERNEL_OK")
</pallas_src>

<mosaic_0001>
module attributes {stable_mosaic.version = 11 : i64} {
  func.func @_proj_kernel(%arg0: i32, %arg1: memref<128x16xbf16, #tpu.memory_space<vmem>>, %arg2: memref<16x16xbf16, #tpu.memory_space<vmem>>, %arg3: memref<16x2xbf16, #tpu.memory_space<vmem>>, %arg4: memref<16x2xbf16, #tpu.memory_space<vmem>>, %arg5: memref<128x16xbf16, #tpu.memory_space<vmem>>, %arg6: memref<128x2xf32, #tpu.memory_space<vmem>>, %arg7: memref<2x128xf32, #tpu.memory_space<vmem>>) attributes {dimension_semantics = [#tpu.dimension_semantics<parallel>], iteration_bounds = array<i64: 1>, scalar_prefetch = 0 : i64, scratch_operands = 0 : i64, tpu.core_type = #tpu.core_type<tc>, window_params = [{transform_indices = @transform_0, window_bounds = array<i64: 128, 16>}, {pipeline_mode = #tpu.pipeline_mode<synchronous>, transform_indices = @transform_1, window_bounds = array<i64: 16, 16>}, {pipeline_mode = #tpu.pipeline_mode<synchronous>, transform_indices = @transform_2, window_bounds = array<i64: 16, 2>}, {pipeline_mode = #tpu.pipeline_mode<synchronous>, transform_indices = @transform_3, window_bounds = array<i64: 16, 2>}, {transform_indices = @transform_4, window_bounds = array<i64: 128, 16>}, {transform_indices = @transform_5, window_bounds = array<i64: 128, 2>}, {transform_indices = @transform_6, window_bounds = array<i64: 2, 128>}]} {
    %c0 = arith.constant 0 : index
    %c0_0 = arith.constant 0 : index
    %0 = vector.load %arg1[%c0, %c0_0] : memref<128x16xbf16, #tpu.memory_space<vmem>>, vector<128x16xbf16>
    %c0_1 = arith.constant 0 : index
    %c0_2 = arith.constant 0 : index
    %1 = vector.load %arg2[%c0_1, %c0_2] : memref<16x16xbf16, #tpu.memory_space<vmem>>, vector<16x16xbf16>
    %cst = arith.constant dense<0.000000e+00> : vector<128x16xf32>
    %2 = tpu.matmul %0, %1, %cst {dimension_numbers = #tpu.dot_dimension_numbers<[1], [0], [0], [1], [0, 0, 1, 1], [], []>} : vector<128x16xbf16>, vector<16x16xbf16>, vector<128x16xf32> -> vector<128x16xf32>
    %3 = arith.truncf %2 : vector<128x16xf32> to vector<128x16xbf16>
    %c0_3 = arith.constant 0 : index
    %c0_4 = arith.constant 0 : index
    %4 = vector.load %arg5[%c0_3, %c0_4] : memref<128x16xbf16, #tpu.memory_space<vmem>>, vector<128x16xbf16>
    tpu.vector_store %arg5[%c0_3, %c0_4], %3 {strides = array<i32>} : memref<128x16xbf16, #tpu.memory_space<vmem>>, vector<128x16xbf16>,
    %c0_5 = arith.constant 0 : index
    %c0_6 = arith.constant 0 : index
    %5 = vector.load %arg3[%c0_5, %c0_6] : memref<16x2xbf16, #tpu.memory_space<vmem>>, vector<16x2xbf16>
    %cst_7 = arith.constant dense<0.000000e+00> : vector<128x2xf32>
    %6 = tpu.matmul %3, %5, %cst_7 {dimension_numbers = #tpu.dot_dimension_numbers<[1], [0], [0], [1], [0, 0, 1, 1], [], []>} : vector<128x16xbf16>, vector<16x2xbf16>, vector<128x2xf32> -> vector<128x2xf32>
    %c0_8 = arith.constant 0 : index
    %c0_9 = arith.constant 0 : index
    %7 = vector.load %arg6[%c0_8, %c0_9] : memref<128x2xf32, #tpu.memory_space<vmem>>, vector<128x2xf32>
    tpu.vector_store %arg6[%c0_8, %c0_9], %6 {strides = array<i32>} : memref<128x2xf32, #tpu.memory_space<vmem>>, vector<128x2xf32>,
    %c0_10 = arith.constant 0 : index
    %c0_11 = arith.constant 0 : index
    %8 = vector.load %arg4[%c0_10, %c0_11] : memref<16x2xbf16, #tpu.memory_space<vmem>>, vector<16x2xbf16>
    %cst_12 = arith.constant dense<0.000000e+00> : vector<2x128xf32>
    %9 = tpu.matmul %8, %3, %cst_12 {dimension_numbers = #tpu.dot_dimension_numbers<[0], [1], [1], [0], [0, 1, 1, 0], [], []>} : vector<16x2xbf16>, vector<128x16xbf16>, vector<2x128xf32> -> vector<2x128xf32>
    %c0_13 = arith.constant 0 : index
    %c0_14 = arith.constant 0 : index
    %10 = vector.load %arg7[%c0_13, %c0_14] : memref<2x128xf32, #tpu.memory_space<vmem>>, vector<2x128xf32>
    tpu.vector_store %arg7[%c0_13, %c0_14], %9 {strides = array<i32>} : memref<2x128xf32, #tpu.memory_space<vmem>>, vector<2x128xf32>,
    return
  }
  func.func @transform_0(%arg0: i32) -> (i32, i32) {
    %c0_i32 = arith.constant 0 : i32
    %c0_i32_0 = arith.constant 0 : i32
    return %arg0, %c0_i32 : i32, i32
  }
  func.func @transform_1(%arg0: i32) -> (i32, i32) {
    %c0_i32 = arith.constant 0 : i32
    %c0_i32_0 = arith.constant 0 : i32
    %c0_i32_1 = arith.constant 0 : i32
    return %c0_i32, %c0_i32_0 : i32, i32
  }
  func.func @transform_2(%arg0: i32) -> (i32, i32) {
    %c0_i32 = arith.constant 0 : i32
    %c0_i32_0 = arith.constant 0 : i32
    %c0_i32_1 = arith.constant 0 : i32
    return %c0_i32, %c0_i32_0 : i32, i32
  }
  func.func @transform_3(%arg0: i32) -> (i32, i32) {
    %c0_i32 = arith.constant 0 : i32
    %c0_i32_0 = arith.constant 0 : i32
    %c0_i32_1 = arith.constant 0 : i32
    return %c0_i32, %c0_i32_0 : i32, i32
  }
  func.func @transform_4(%arg0: i32) -> (i32, i32) {
    %c0_i32 = arith.constant 0 : i32
    %c0_i32_0 = arith.constant 0 : i32
    return %arg0, %c0_i32 : i32, i32
  }
  func.func @transform_5(%arg0: i32) -> (i32, i32) {
    %c0_i32 = arith.constant 0 : i32
    %c0_i32_0 = arith.constant 0 : i32
    return %arg0, %c0_i32 : i32, i32
  }
  func.func @transform_6(%arg0: i32) -> (i32, i32) {
    %c0_i32 = arith.constant 0 : i32
    %c0_i32_0 = arith.constant 0 : i32
    return %c0_i32, %arg0 : i32, i32
  }
}

</mosaic_0001>

<bundles_post_ra>
// kernel: tpu_custom_call.1
= control target key start
LH: loop header
LB: loop body
LE: loop exit
PB: predicated region body
PF: predicated region fallthrough
CT: control target
= control target key end

     0   :  { %vm86_vm0 = vcmask 130048   ;;  %s952_s0 = inlined_call_operand.vmem [shape: bf16[128,16], index: 0, kind: input, shape index: {}]   ;;  %s953_s1 = inlined_call_operand.vmem [shape: bf16[16,16], index: 1, kind: input, shape index: {}]   ;;  %s954_s2 = inlined_call_operand.vmem [shape: bf16[16,2], index: 2, kind: input, shape index: {}]   ;;  %s955_s3 = inlined_call_operand.vmem [shape: bf16[16,2], index: 3, kind: input, shape index: {}]   ;;  %s956_s4 = inlined_call_operand.vmem [shape: bf16[128,16], index: 4, kind: output, shape index: {0}]   ;;  %s957_s5 = inlined_call_operand.vmem [shape: f32[128,2], index: 5, kind: output, shape index: {1}]   ;;  %s958_s6 = inlined_call_operand.hbm [shape: f32[2,128], index: 6, kind: output, shape index: {2}]  }
   0x1   :  { %v672_v0 = vld [vmem:[%s953_s1] sm:$0xff]   ;;  %v674_v2 = vld [vmem:[%s952_s0 + $0x8] sm:$0xff]   ;;  %v675_v3 = vld [vmem:[%s952_s0 + $0x10] sm:$0xff]  }
   0x2   :  { %v673_v1 = vld [vmem:[%s952_s0] sm:$0xff]   ;;  %612 = vmatprep.subr.bf16.mxu1 %v672_v0  ;;  %v676_v4 = vld [vmem:[%s952_s0 + $0x18] sm:$0xff]  }
   0x3   :  { %613 = vmatpush3.bf16.msra.mxu1 %v672_v0  ;;  %614 = vmatprep.mubr.msk.bf16.mxu1 %vm86_vm0, %v673_v1  ;;  %v681_v5 = vld [vmem:[%s955_s3] sm:$0xff]  }
   0x6   :  { %615 = vmatmul.mubr.msk.bf16.vlgmr.msra.gmra.mrb[0].mxu1 %vm86_vm0, %v674_v2 }
   0x7   :  { %618 = vmatprep.mubr.msk.bf16.mxu1 %vm86_vm0, %v675_v3 }
   0x8   :  { %12 = vsyncpa [#allocation3], 0  ;;  %v677_v6 = vld [vmem:[%s952_s0 + $0x20] sm:$0xff]   ;;  %443 = vxpose.xlu0.c.b16.start.end [1/1] (short) (narrow) %v681_v5, 16  ;;  %v678_v7 = vld [vmem:[%s952_s0 + $0x28] sm:$0xff]   ;;  %v707_v11 = vmov 0.0  }
   0x9   :  { %v679_v8 = vld [vmem:[%s952_s0 + $0x30] sm:$0xff]   ;;  %v680_v9 = vld [vmem:[%s952_s0 + $0x38] sm:$0xff]   ;;  %v682_v10 = vld [vmem:[%s954_s2] sm:$0xff]   ;;  %648 = vmatprep.subr.bf16.mxu0 %v707_v11  ;;  %vm708_vm1 = vmmov 0   ;;  %vm272_vm2 = vcmask 125952   ;;  %vm418_vm3 = vcmask 15360  }
   0xa   :  { %630 = vmatprep.subr.bf16.mxu1 %v682_v10  ;;  %664 = vmatprep.mubr.msk.bf16.mxu0 %vm708_vm1, %v707_v11  ;;  %s709_s21 = smov [#allocation2]  }
   0xb   :  { %631 = vmatpush3.bf16.msra.mxu1 %v682_v10  ;;  %s513_s22 = sshll.u32 %s709_s21, 4  ;;  %s514_s22 = int_to_ptr.vmem [resolvable:$true] %s513_s22 }
   0xc   :  { %s683_s23 = scalar_lea.vmem %s514_s22, 32  ;;  %p688_p1 = scmp.lt.s32.totalorder %s514_s22, %s514_s22 }
   0xd   :  { %p684_p0 = scmp.ne.s32.totalorder %s514_s22, %s683_s23  ;;  %p689_p2 = scmp.lt.s32.totalorder %s683_s23, %s683_s23 }
   0xe   :  { %619 = vmatmul.mubr.msk.bf16.gmra.mrb[4].mxu1 %vm86_vm0, %v676_v4 }
   0xf   :  { %622 = vmatprep.mubr.msk.bf16.mxu1 %vm86_vm0, %v677_v6  ;;  %p690_p3 = por %p689_p2, %p688_p1 }
  0x11   :  { %p691_p4 = pnand %p690_p3, %p684_p0 }
  0x16   :  { %623 = vmatmul.mubr.msk.bf16.gmra.mrb[8].mxu1 %vm86_vm0, %v678_v7 }
  0x17   :  { %626 = vmatprep.mubr.msk.bf16.mxu1 %vm86_vm0, %v679_v8 }
  0x1e   :  { %627 = vmatmul.mubr.msk.bf16.gmra.mrb[12].mxu1 %vm86_vm0, %v680_v9 }
  0x6e   :  { %v451_v60 = vpop.trf.xlu0 }
  0xd9   :  { %v616_v12 = vpop.f32.mrb[0].mxu1 }
  0xda   :  { %v571_v13 = vpack.c.bf16 %v616_v12, %v616_v12  ;;  %v145_v14 = vpop.f32.mrb[1].mxu1 }
  0xdb   :  { %v569_v15 = vpack.c.bf16 %v145_v14, %v145_v14  ;;  %v617_v16 = vpop.f32.mrb[2].mxu1 }
  0xdc   :  { %275 = vst.msk [vmem:[%s956_s4 + $0x8] sm:$0xf] %vm272_vm2, %v571_v13  ;;  %v209_v17 = vpack.c.bf16 %v617_v16, %v616_v12  ;;  %v572_v18 = vpack.c.bf16 %v617_v16, %v617_v16  ;;  %v148_v19 = vpop.f32.mrb[3].mxu1 }
  0xdd   :  { %273 = vst.msk [vmem:[%s956_s4] sm:$0xf] %vm272_vm2, %v569_v15  ;;  %v208_v20 = vpack.c.bf16 %v148_v19, %v145_v14  ;;  %v570_v21 = vpack.c.bf16 %v148_v19, %v148_v19 }
  0xde   :  { %276 = vst.msk [vmem:[%s956_s4 + $0xc] sm:$0xf] %vm272_vm2, %v572_v18  ;;  %v301_v33 = vsel %vm86_vm0, %v209_v17, 0 }
  0xdf   :  { %274 = vst.msk [vmem:[%s956_s4 + $0x4] sm:$0xf] %vm272_vm2, %v570_v21  ;;  %632 = vmatprep.mubr.msk.bf16.mxu1 %vm86_vm0, %v208_v20  ;;  %v298_v22 = vsel %vm86_vm0, %v208_v20, 0 }
  0xe0   :  { %633 = vmatmul.mubr.msk.bf16.vlgmr.msra.gmra.mrb[16].mxu1 %vm86_vm0, %v209_v17  ;;  %649 = vmatpush3.bf16.xpose.msra.mxu0 %v298_v22 }
  0xe1   :  { %v620_v23 = vpop.f32.mrb[4].mxu1  ;;  %650 = vmatprep.subr.bf16.mxu0 %v707_v11 }
  0xe2   :  { %v575_v24 = vpack.c.bf16 %v620_v23, %v620_v23  ;;  %v161_v25 = vpop.f32.mrb[5].mxu1 }
  0xe3   :  { %v573_v26 = vpack.c.bf16 %v161_v25, %v161_v25  ;;  %v621_v27 = vpop.f32.mrb[6].mxu1 }
  0xe4   :  { %279 = vst.msk [vmem:[%s956_s4 + $0x18] sm:$0xf] %vm272_vm2, %v575_v24  ;;  %v211_v28 = vpack.c.bf16 %v621_v27, %v620_v23  ;;  %v576_v29 = vpack.c.bf16 %v621_v27, %v621_v27  ;;  %v164_v30 = vpop.f32.mrb[7].mxu1 }
  0xe5   :  { %277 = vst.msk [vmem:[%s956_s4 + $0x10] sm:$0xf] %vm272_vm2, %v573_v26  ;;  %v210_v31 = vpack.c.bf16 %v164_v30, %v161_v25  ;;  %v574_v32 = vpack.c.bf16 %v164_v30, %v164_v30 }
  0xe6   :  { %280 = vst.msk [vmem:[%s956_s4 + $0x1c] sm:$0xf] %vm272_vm2, %v576_v29  ;;  %v307_v55 = vsel %vm86_vm0, %v211_v28, 0 }
  0xe7   :  { %278 = vst.msk [vmem:[%s956_s4 + $0x14] sm:$0xf] %vm272_vm2, %v574_v32  ;;  %636 = vmatprep.mubr.msk.bf16.mxu1 %vm86_vm0, %v210_v31  ;;  %v304_v44 = vsel %vm86_vm0, %v210_v31, 0 }
  0xe8   :  { %651 = vmatpush3.bf16.xpose.msra.mxu0 %v301_v33  ;;  %637 = vmatmul.mubr.msk.bf16.gmra.mrb[20].mxu1 %vm86_vm0, %v211_v28 }
  0xe9   :  { %652 = vmatprep.subr.bf16.mxu0 %v707_v11  ;;  %v624_v34 = vpop.f32.mrb[8].mxu1 }
  0xea   :  { %v579_v35 = vpack.c.bf16 %v624_v34, %v624_v34  ;;  %v177_v36 = vpop.f32.mrb[9].mxu1 }
  0xeb   :  { %v577_v37 = vpack.c.bf16 %v177_v36, %v177_v36  ;;  %v625_v38 = vpop.f32.mrb[10].mxu1 }
  0xec   :  { %283 = vst.msk [vmem:[%s956_s4 + $0x28] sm:$0xf] %vm272_vm2, %v579_v35  ;;  %v213_v39 = vpack.c.bf16 %v625_v38, %v624_v34  ;;  %v580_v40 = vpack.c.bf16 %v625_v38, %v625_v38  ;;  %v180_v41 = vpop.f32.mrb[11].mxu1 }
  0xed   :  { %281 = vst.msk [vmem:[%s956_s4 + $0x20] sm:$0xf] %vm272_vm2, %v577_v37  ;;  %v212_v42 = vpack.c.bf16 %v180_v41, %v177_v36  ;;  %v578_v43 = vpack.c.bf16 %v180_v41, %v180_v41 }
  0xee   :  { %284 = vst.msk [vmem:[%s956_s4 + $0x2c] sm:$0xf] %vm272_vm2, %v580_v40  ;;  %v313_v57 = vsel %vm86_vm0, %v213_v39, 0 }
  0xef   :  { %282 = vst.msk [vmem:[%s956_s4 + $0x24] sm:$0xf] %vm272_vm2, %v578_v43  ;;  %640 = vmatprep.mubr.msk.bf16.mxu1 %vm86_vm0, %v212_v42  ;;  %v310_v56 = vsel %vm86_vm0, %v212_v42, 0 }
  0xf0   :  { %653 = vmatpush3.bf16.xpose.msra.mxu0 %v304_v44  ;;  %641 = vmatmul.mubr.msk.bf16.gmra.mrb[24].mxu1 %vm86_vm0, %v213_v39 }
  0xf1   :  { %654 = vmatprep.subr.bf16.mxu0 %v707_v11  ;;  %v628_v45 = vpop.f32.mrb[12].mxu1 }
  0xf2   :  { %v583_v46 = vpack.c.bf16 %v628_v45, %v628_v45  ;;  %v193_v47 = vpop.f32.mrb[13].mxu1 }
  0xf3   :  { %v581_v48 = vpack.c.bf16 %v193_v47, %v193_v47  ;;  %v629_v49 = vpop.f32.mrb[14].mxu1 }
  0xf4   :  { %287 = vst.msk [vmem:[%s956_s4 + $0x38] sm:$0xf] %vm272_vm2, %v583_v46  ;;  %v215_v50 = vpack.c.bf16 %v629_v49, %v628_v45  ;;  %v584_v51 = vpack.c.bf16 %v629_v49, %v629_v49  ;;  %v196_v52 = vpop.f32.mrb[15].mxu1 }
  0xf5   :  { %285 = vst.msk [vmem:[%s956_s4 + $0x30] sm:$0xf] %vm272_vm2, %v581_v48  ;;  %v214_v53 = vpack.c.bf16 %v196_v52, %v193_v47  ;;  %v582_v54 = vpack.c.bf16 %v196_v52, %v196_v52 }
  0xf6   :  { %288 = vst.msk [vmem:[%s956_s4 + $0x3c] sm:$0xf] %vm272_vm2, %v584_v51  ;;  %v319_v59 = vsel %vm86_vm0, %v215_v50, 0 }
  0xf7   :  { %286 = vst.msk [vmem:[%s956_s4 + $0x34] sm:$0xf] %vm272_vm2, %v582_v54  ;;  %644 = vmatprep.mubr.msk.bf16.mxu1 %vm86_vm0, %v214_v53  ;;  %v316_v58 = vsel %vm86_vm0, %v214_v53, 0 }
  0xf8   :  { %655 = vmatpush3.bf16.xpose.msra.mxu0 %v307_v55  ;;  %645 = vmatmul.mubr.msk.bf16.gmra.mrb[28].mxu1 %vm86_vm0, %v215_v50 }
  0xf9   :  { %656 = vmatprep.subr.bf16.mxu0 %v707_v11 }
 0x100   :  { %657 = vmatpush3.bf16.xpose.msra.mxu0 %v310_v56 }
 0x101   :  { %658 = vmatprep.subr.bf16.mxu0 %v707_v11 }
 0x108   :  { %659 = vmatpush3.bf16.xpose.msra.mxu0 %v313_v57 }
 0x109   :  { %660 = vmatprep.subr.bf16.mxu0 %v707_v11 }
 0x110   :  { %661 = vmatpush3.bf16.xpose.msra.mxu0 %v316_v58 }
 0x111   :  { %662 = vmatprep.subr.bf16.mxu0 %v707_v11 }
 0x118   :  { %663 = vmatpush3.bf16.xpose.msra.mxu0 %v319_v59 }
 0x11f   :  { %665 = vmatmul.mubr.msk.bf16.vlgmr.msra.gmra.mrb[0].mxu0 %vm86_vm0, %v451_v60 }
 0x1b3   :  { %v634_v61 = vpop.f32.mrb[16].mxu1 }
 0x1b4   :  { %421 = vst.msk [vmem:[%s957_s5 + $0x10] sm:$0xff] %vm418_vm3, %v634_v61  ;;  %v355_v62 = vpop.f32.mrb[17].mxu1 }
 0x1b5   :  { %419 = vst.msk [vmem:[%s957_s5] sm:$0xff] %vm418_vm3, %v355_v62  ;;  %v635_v63 = vpop.f32.mrb[18].mxu1 }
 0x1b6   :  { %422 = vst.msk [vmem:[%s957_s5 + $0x18] sm:$0xff] %vm418_vm3, %v635_v63  ;;  %v358_v0 = vpop.f32.mrb[19].mxu1 }
 0x1b7   :  { %420 = vst.msk [vmem:[%s957_s5 + $0x8] sm:$0xff] %vm418_vm3, %v358_v0 }
 0x1bb   :  { %v638_v1 = vpop.f32.mrb[20].mxu1 }
 0x1bc   :  { %425 = vst.msk [vmem:[%s957_s5 + $0x30] sm:$0xff] %vm418_vm3, %v638_v1  ;;  %v371_v2 = vpop.f32.mrb[21].mxu1 }
 0x1bd   :  { %423 = vst.msk [vmem:[%s957_s5 + $0x20] sm:$0xff] %vm418_vm3, %v371_v2  ;;  %v639_v3 = vpop.f32.mrb[22].mxu1 }
 0x1be   :  { %426 = vst.msk [vmem:[%s957_s5 + $0x38] sm:$0xff] %vm418_vm3, %v639_v3  ;;  %v374_v4 = vpop.f32.mrb[23].mxu1 }
 0x1bf   :  { %424 = vst.msk [vmem:[%s957_s5 + $0x28] sm:$0xff] %vm418_vm3, %v374_v4 }
 0x1c3   :  { %v642_v5 = vpop.f32.mrb[24].mxu1 }
 0x1c4   :  { %429 = vst.msk [vmem:[%s957_s5 + $0x50] sm:$0xff] %vm418_vm3, %v642_v5  ;;  %v387_v6 = vpop.f32.mrb[25].mxu1 }
 0x1c5   :  { %427 = vst.msk [vmem:[%s957_s5 + $0x40] sm:$0xff] %vm418_vm3, %v387_v6  ;;  %v643_v7 = vpop.f32.mrb[26].mxu1 }
 0x1c6   :  { %430 = vst.msk [vmem:[%s957_s5 + $0x58] sm:$0xff] %vm418_vm3, %v643_v7  ;;  %v390_v8 = vpop.f32.mrb[27].mxu1 }
 0x1c7   :  { %428 = vst.msk [vmem:[%s957_s5 + $0x48] sm:$0xff] %vm418_vm3, %v390_v8 }
 0x1cb   :  { %v646_v9 = vpop.f32.mrb[28].mxu1 }
 0x1cc   :  { %433 = vst.msk [vmem:[%s957_s5 + $0x70] sm:$0xff] %vm418_vm3, %v646_v9  ;;  %v403_v10 = vpop.f32.mrb[29].mxu1 }
 0x1cd   :  { %431 = vst.msk [vmem:[%s957_s5 + $0x60] sm:$0xff] %vm418_vm3, %v403_v10  ;;  %v647_v11 = vpop.f32.mrb[30].mxu1 }
 0x1ce   :  { %434 = vst.msk [vmem:[%s957_s5 + $0x78] sm:$0xff] %vm418_vm3, %v647_v11  ;;  %v406_v12 = vpop.f32.mrb[31].mxu1 }
 0x1cf   :  { %432 = vst.msk [vmem:[%s957_s5 + $0x68] sm:$0xff] %vm418_vm3, %v406_v12 }
 0x1f2   :  { %v496_v13 = vpop.f32.mrb[0].mxu0 }
 0x1f3   :  { %502 = vst [vmem:[#allocation2] sm:$0x3] %v496_v13  ;;  %v666_v14 = vpop.f32.mrb[1].mxu0 }
 0x1f4   :  { %v499_v15 = vpop.f32.mrb[2].mxu0 }
 0x1f5   :  { %694 = shalt.err (!%p691_p4)
}
 0x1f6   :  { %s695_s26 = scalar_lea.hbm %s958_s6, 32 }
 0x1f7   :  { %p696_p5 = scmp.ne.s32.totalorder %s958_s6, %s695_s26  ;;  %p699_p6 = scmp.lt.u32.totalorder %s695_s26, %s958_s6 }
 0x1f9   :  { %p701_p7 = pnand %p699_p6, %p696_p5 }
 0x1fb   :  { %704 = shalt.err (!%p701_p7)
}
 0x1fc   :  { %516 = dma.vmem_to_hbm [thread:$0]  %s514_s22, 32, %s958_s6, [#allocation3]   ;;  %v667_v16 = vpop.f32.mrb[3].mxu0 }
 0x1fd   :  { %705 = dma.done.wait [#allocation3], 32  }
 0x1fe   :  { %706 = vsyncadd [#allocation3], 4294967264 }
 0x1ff   :  { %524 = vsyncpa [#allocation3], 1 }

</bundles_post_ra>
